<compile_context>
chip_gen: v7x
topology: tpu7x:2x2x1
jax: 0.10.0
libtpu: 0.0.40
codegen_flags: <defaults>
</compile_context>

<pallas_src>
import jax
import jax.numpy as jnp
from jax.experimental import pallas as pl
from jax.experimental.pallas import tpu as pltpu

# Hyper-parameters implied by the PyTorch module
EMBED_DIM = 16        # embedding_dim_drug / embedding_dim_target (hyber_para)
CONV_OUT = 4          # qubits_cirAorB
KSIZE = 4
SEQ_LEN = 16          # 2 * CONV_OUT * SEQ_LEN == 128 == FC1 input features
FC1_IN, FC1_OUT = 128, 32
FC2_OUT = 1
NEG_SLOPE = 0.01      # F.leaky_relu default negative slope
PAD_L, PAD_R = 1, 2   # torch Conv1d padding='same' for k=4, stride=1
PATCH = EMBED_DIM * KSIZE          # 64 features per branch per position
FOLD_IN = SEQ_LEN * 2 * PATCH      # 2048 = im2col features per batch row


def _leaky(x):
    return jnp.where(x > 0, x, NEG_SLOPE * x)


def _round_up(n, m):
    return (n + m - 1) // m * m


def cnn_kernel(x_ref,                 # (block_b, 2048) im2col'd drug|target
               wc_ref, bc_ref,        # (2048, 128), (1, 128)  conv (block layout)
               w1_ref, b1_ref,        # (128, 32), (1, 32)     FC1
               w2_ref, b2_ref,        # (32, 1), (1, 1)        FC2
               out_ref):              # (block_b, 1)
    # Conv1d('same') for both branches as one lane-dense matmul; output columns
    # are already in torch's cat(dim=1).view(B,-1) order (ch8*L + pos), so FC1
    # chains directly with no relayout.
    feats = jnp.dot(x_ref[...], wc_ref[...],
                    preferred_element_type=jnp.float32) + bc_ref[...]
    h = _leaky(jnp.dot(feats, w1_ref[...],
                       preferred_element_type=jnp.float32) + b1_ref[...])
    o = _leaky(jnp.dot(h, w2_ref[...],
                       preferred_element_type=jnp.float32) + b2_ref[...])
    out_ref[...] = o.astype(out_ref.dtype)


def _im2col(x_pad):
    """(B, Cin, L+K-1) -> (B, L, Cin*K): taps of the cross-correlation window."""
    b = x_pad.shape[0]
    idx = jnp.arange(SEQ_LEN)[:, None] + jnp.arange(KSIZE)[None, :]   # (L, K)
    patches = x_pad[:, :, idx]                                        # (B, Cin, L, K)
    patches = jnp.transpose(patches, (0, 2, 1, 3))                    # (B, L, Cin, K)
    return patches.reshape(b, SEQ_LEN, PATCH)


def _prep_weights(params):
    """Re-layout torch-convention params into the kernel's matmul operands."""
    # Per-branch im2col conv weights: column p = c*K + k.
    wd_col = params['wd'].reshape(CONV_OUT, PATCH).T          # (64, 4)
    wt_col = params['wt'].reshape(CONV_OUT, PATCH).T          # (64, 4)
    wbd = jnp.zeros((2 * PATCH, 2 * CONV_OUT), jnp.float32)   # (128, 8)
    wbd = wbd.at[:PATCH, :CONV_OUT].set(wd_col)
    wbd = wbd.at[PATCH:, CONV_OUT:].set(wt_col)
    # Expand per-position so the matmul output lands directly in the torch
    # flatten order f = ch8*L + pos:  W[l*128+p, c*L+m] = wbd[p, c] * (l == m).
    eye = jnp.eye(SEQ_LEN, dtype=jnp.float32)
    w_conv = jnp.einsum('pc,lm->lpcm', wbd, eye).reshape(FOLD_IN, FC1_IN)
    bconv = jnp.concatenate([params['bd'], params['bt']])     # (8,)
    b_conv = jnp.repeat(bconv, SEQ_LEN).reshape(1, FC1_IN)    # (1, 128)

    w1 = params['w1'].T                                       # (128, 32)
    b1 = params['b1'].reshape(1, FC1_OUT)
    w2 = params['w2'].T                                       # (32, 1)
    b2 = params['b2'].reshape(1, FC2_OUT)
    return w_conv, b_conv, w1, b1, w2, b2


def cnn_layer_based(drug, target, params):
    """Pallas forward of CNNLayerBased.  drug/target: (B, 16, 16) float32."""
    B = drug.shape[0]
    # torch Conv1d padding='same' (k=4, stride=1): pad_left=1, pad_right=2.
    drug_pad = jnp.pad(drug, ((0, 0), (0, 0), (PAD_L, PAD_R)))
    target_pad = jnp.pad(target, ((0, 0), (0, 0), (PAD_L, PAD_R)))

    # One lane-dense activation slab per batch row: (B, L, 128) -> (B, 2048),
    # row layout (l major, [drug c*K+k | target c*K+k] minor).
    x = jnp.concatenate([_im2col(drug_pad), _im2col(target_pad)], axis=-1)
    x = x.reshape(B, FOLD_IN)

    w_conv, b_conv, w1, b1, w2, b2 = _prep_weights(params)

    # Batch-blocked 1-D grid: activations stream (double-buffered), weights
    # stay resident; "parallel" lets v7x shard blocks across its 2 TensorCores.
    block_b = min(256, _round_up(B, 8))
    b_pad = _round_up(B, block_b)
    if b_pad != B:
        x = jnp.pad(x, ((0, b_pad - B), (0, 0)))
    grid = (b_pad // block_b,)

    out = pl.pallas_call(
        cnn_kernel,
        out_shape=jax.ShapeDtypeStruct((b_pad, FC2_OUT), jnp.float32),
        grid=grid,
        in_specs=[
            pl.BlockSpec((block_b, FOLD_IN), lambda i: (i, 0)),   # activations
            pl.BlockSpec((FOLD_IN, FC1_IN), lambda i: (0, 0)),    # conv weights
            pl.BlockSpec((1, FC1_IN), lambda i: (0, 0)),
            pl.BlockSpec((FC1_IN, FC1_OUT), lambda i: (0, 0)),    # FC1
            pl.BlockSpec((1, FC1_OUT), lambda i: (0, 0)),
            pl.BlockSpec((FC1_OUT, FC2_OUT), lambda i: (0, 0)),   # FC2
            pl.BlockSpec((1, FC2_OUT), lambda i: (0, 0)),
        ],
        out_specs=pl.BlockSpec((block_b, FC2_OUT), lambda i: (i, 0)),
        compiler_params=pltpu.CompilerParams(
            dimension_semantics=("parallel",)),
    )(x, w_conv, b_conv, w1, b1, w2, b2)
    return out[:B]


def init_params(key):
    """Deterministic synthetic params (torch Linear/Conv1d-style uniform init)."""
    ks = jax.random.split(key, 8)

    def u(k, shape, fan_in):
        bound = 1.0 / jnp.sqrt(float(fan_in))
        return jax.random.uniform(k, shape, jnp.float32, -bound, bound)

    conv_fan = EMBED_DIM * KSIZE
    return dict(
        wd=u(ks[0], (CONV_OUT, EMBED_DIM, KSIZE), conv_fan),
        bd=u(ks[1], (CONV_OUT,), conv_fan),
        wt=u(ks[2], (CONV_OUT, EMBED_DIM, KSIZE), conv_fan),
        bt=u(ks[3], (CONV_OUT,), conv_fan),
        w1=u(ks[4], (FC1_OUT, FC1_IN), FC1_IN),   # torch layout (out, in)
        b1=u(ks[5], (FC1_OUT,), FC1_IN),
        w2=u(ks[6], (FC2_OUT, FC1_OUT), FC1_OUT),
        b2=u(ks[7], (FC2_OUT,), FC1_OUT),
    )


def reference_forward(drug, target, p):
    """Pure-JAX reference mirroring the PyTorch forward exactly."""
    def conv(x, w, b):
        y = jax.lax.conv_general_dilated(
            x, w, window_strides=(1,), padding=[(PAD_L, PAD_R)],
            dimension_numbers=('NCH', 'OIH', 'NCH'))
        return y + b[None, :, None]

    d = conv(drug, p['wd'], p['bd'])
    t = conv(target, p['wt'], p['bt'])
    feats = jnp.concatenate([d, t], axis=1).reshape(drug.shape[0], -1)
    h = _leaky(feats @ p['w1'].T + p['b1'][None, :])
    o = _leaky(h @ p['w2'].T + p['b2'][None, :])
    return o


if __name__ == "__main__":
    key = jax.random.PRNGKey(0)
    kp, kd, kt = jax.random.split(key, 3)
    params = init_params(kp)

    B = 2
    drug_input = jax.random.normal(kd, (B, EMBED_DIM, SEQ_LEN), jnp.float32)
    target_input = jax.random.normal(kt, (B, EMBED_DIM, SEQ_LEN), jnp.float32)

    out = cnn_layer_based(drug_input, target_input, params)
    out = jax.block_until_ready(out)

    ref = reference_forward(drug_input, target_input, params)
    assert out.shape == (B, FC2_OUT), out.shape
    # Tolerance allows for MXU default-precision accumulation-order differences
    # between the single 2048-deep contraction and the reference's two stages.
    if not jnp.allclose(out, ref, atol=1e-4, rtol=1e-4):
        raise AssertionError(f"Pallas/reference mismatch:\n{out}\nvs\n{ref}")

    print("KERNEL_OK")
</pallas_src>

<mosaic_0001>
module attributes {stable_mosaic.version = 11 : i64} {
  func.func @cnn_kernel(%arg0: i32, %arg1: memref<8x2048xf32, #tpu.memory_space<vmem>>, %arg2: memref<2048x128xf32, #tpu.memory_space<vmem>>, %arg3: memref<1x128xf32, #tpu.memory_space<vmem>>, %arg4: memref<128x32xf32, #tpu.memory_space<vmem>>, %arg5: memref<1x32xf32, #tpu.memory_space<vmem>>, %arg6: memref<32x1xf32, #tpu.memory_space<vmem>>, %arg7: memref<1x1xf32, #tpu.memory_space<vmem>>, %arg8: memref<8x1xf32, #tpu.memory_space<vmem>>) attributes {dimension_semantics = [#tpu.dimension_semantics<parallel>], iteration_bounds = array<i64: 1>, scalar_prefetch = 0 : i64, scratch_operands = 0 : i64, tpu.core_type = #tpu.core_type<tc>, window_params = [{transform_indices = @transform_0, window_bounds = array<i64: 8, 2048>}, {pipeline_mode = #tpu.pipeline_mode<synchronous>, transform_indices = @transform_1, window_bounds = array<i64: 2048, 128>}, {pipeline_mode = #tpu.pipeline_mode<synchronous>, transform_indices = @transform_2, window_bounds = array<i64: 1, 128>}, {pipeline_mode = #tpu.pipeline_mode<synchronous>, transform_indices = @transform_3, window_bounds = array<i64: 128, 32>}, {pipeline_mode = #tpu.pipeline_mode<synchronous>, transform_indices = @transform_4, window_bounds = array<i64: 1, 32>}, {pipeline_mode = #tpu.pipeline_mode<synchronous>, transform_indices = @transform_5, window_bounds = array<i64: 32, 1>}, {pipeline_mode = #tpu.pipeline_mode<synchronous>, transform_indices = @transform_6, window_bounds = array<i64: 1, 1>}, {transform_indices = @transform_7, window_bounds = array<i64: 8, 1>}]} {
    %c0 = arith.constant 0 : index
    %c0_0 = arith.constant 0 : index
    %0 = vector.load %arg1[%c0, %c0_0] : memref<8x2048xf32, #tpu.memory_space<vmem>>, vector<8x2048xf32>
    %c0_1 = arith.constant 0 : index
    %c0_2 = arith.constant 0 : index
    %1 = vector.load %arg2[%c0_1, %c0_2] : memref<2048x128xf32, #tpu.memory_space<vmem>>, vector<2048x128xf32>
    %cst = arith.constant dense<0.000000e+00> : vector<8x128xf32>
    %2 = tpu.matmul %0, %1, %cst {dimension_numbers = #tpu.dot_dimension_numbers<[1], [0], [0], [1], [0, 0, 1, 1], [], []>} : vector<8x2048xf32>, vector<2048x128xf32>, vector<8x128xf32> -> vector<8x128xf32>
    %c0_3 = arith.constant 0 : index
    %c0_4 = arith.constant 0 : index
    %3 = vector.load %arg3[%c0_3, %c0_4] : memref<1x128xf32, #tpu.memory_space<vmem>>, vector<1x128xf32>
    %4 = vector.broadcast %3 : vector<1x128xf32> to vector<8x128xf32>
    %5 = arith.addf %2, %4 : vector<8x128xf32>
    %c0_5 = arith.constant 0 : index
    %c0_6 = arith.constant 0 : index
    %6 = vector.load %arg4[%c0_5, %c0_6] : memref<128x32xf32, #tpu.memory_space<vmem>>, vector<128x32xf32>
    %cst_7 = arith.constant dense<0.000000e+00> : vector<8x32xf32>
    %7 = tpu.matmul %5, %6, %cst_7 {dimension_numbers = #tpu.dot_dimension_numbers<[1], [0], [0], [1], [0, 0, 1, 1], [], []>} : vector<8x128xf32>, vector<128x32xf32>, vector<8x32xf32> -> vector<8x32xf32>
    %c0_8 = arith.constant 0 : index
    %c0_9 = arith.constant 0 : index
    %8 = vector.load %arg5[%c0_8, %c0_9] : memref<1x32xf32, #tpu.memory_space<vmem>>, vector<1x32xf32>
    %9 = vector.broadcast %8 : vector<1x32xf32> to vector<8x32xf32>
    %10 = arith.addf %7, %9 : vector<8x32xf32>
    %cst_10 = arith.constant 0.000000e+00 : f32
    %11 = vector.broadcast %cst_10 : f32 to vector<8x32xf32>
    %12 = arith.cmpf ogt, %10, %11 : vector<8x32xf32>
    %cst_11 = arith.constant 0.00999999977 : f32
    %13 = vector.broadcast %cst_11 : f32 to vector<8x32xf32>
    %14 = arith.mulf %13, %10 : vector<8x32xf32>
    %15 = arith.select %12, %10, %14 : vector<8x32xi1>, vector<8x32xf32>
    %c0_12 = arith.constant 0 : index
    %c0_13 = arith.constant 0 : index
    %16 = vector.load %arg6[%c0_12, %c0_13] : memref<32x1xf32, #tpu.memory_space<vmem>>, vector<32x1xf32>
    %cst_14 = arith.constant dense<0.000000e+00> : vector<8x1xf32>
    %17 = tpu.matmul %15, %16, %cst_14 {dimension_numbers = #tpu.dot_dimension_numbers<[1], [0], [0], [1], [0, 0, 1, 1], [], []>} : vector<8x32xf32>, vector<32x1xf32>, vector<8x1xf32> -> vector<8x1xf32>
    %c0_15 = arith.constant 0 : index
    %c0_16 = arith.constant 0 : index
    %18 = vector.load %arg7[%c0_15, %c0_16] : memref<1x1xf32, #tpu.memory_space<vmem>>, vector<1x1xf32>
    %19 = vector.broadcast %18 : vector<1x1xf32> to vector<8x1xf32>
    %20 = arith.addf %17, %19 : vector<8x1xf32>
    %cst_17 = arith.constant 0.000000e+00 : f32
    %21 = vector.broadcast %cst_17 : f32 to vector<8x1xf32>
    %22 = arith.cmpf ogt, %20, %21 : vector<8x1xf32>
    %cst_18 = arith.constant 0.00999999977 : f32
    %23 = vector.broadcast %cst_18 : f32 to vector<8x1xf32>
    %24 = arith.mulf %23, %20 : vector<8x1xf32>
    %25 = arith.select %22, %20, %24 : vector<8x1xi1>, vector<8x1xf32>
    %c0_19 = arith.constant 0 : index
    %c0_20 = arith.constant 0 : index
    %26 = vector.load %arg8[%c0_19, %c0_20] : memref<8x1xf32, #tpu.memory_space<vmem>>, vector<8x1xf32>
    tpu.vector_store %arg8[%c0_19, %c0_20], %25 {strides = array<i32>} : memref<8x1xf32, #tpu.memory_space<vmem>>, vector<8x1xf32>,
    return
  }
  func.func @transform_0(%arg0: i32) -> (i32, i32) {
    %c0_i32 = arith.constant 0 : i32
    %c0_i32_0 = arith.constant 0 : i32
    return %arg0, %c0_i32 : i32, i32
  }
  func.func @transform_1(%arg0: i32) -> (i32, i32) {
    %c0_i32 = arith.constant 0 : i32
    %c0_i32_0 = arith.constant 0 : i32
    %c0_i32_1 = arith.constant 0 : i32
    return %c0_i32, %c0_i32_0 : i32, i32
  }
  func.func @transform_2(%arg0: i32) -> (i32, i32) {
    %c0_i32 = arith.constant 0 : i32
    %c0_i32_0 = arith.constant 0 : i32
    %c0_i32_1 = arith.constant 0 : i32
    return %c0_i32, %c0_i32_0 : i32, i32
  }
  func.func @transform_3(%arg0: i32) -> (i32, i32) {
    %c0_i32 = arith.constant 0 : i32
    %c0_i32_0 = arith.constant 0 : i32
    %c0_i32_1 = arith.constant 0 : i32
    return %c0_i32, %c0_i32_0 : i32, i32
  }
  func.func @transform_4(%arg0: i32) -> (i32, i32) {
    %c0_i32 = arith.constant 0 : i32
    %c0_i32_0 = arith.constant 0 : i32
    %c0_i32_1 = arith.constant 0 : i32
    return %c0_i32, %c0_i32_0 : i32, i32
  }
  func.func @transform_5(%arg0: i32) -> (i32, i32) {
    %c0_i32 = arith.constant 0 : i32
    %c0_i32_0 = arith.constant 0 : i32
    %c0_i32_1 = arith.constant 0 : i32
    return %c0_i32, %c0_i32_0 : i32, i32
  }
  func.func @transform_6(%arg0: i32) -> (i32, i32) {
    %c0_i32 = arith.constant 0 : i32
    %c0_i32_0 = arith.constant 0 : i32
    %c0_i32_1 = arith.constant 0 : i32
    return %c0_i32, %c0_i32_0 : i32, i32
  }
  func.func @transform_7(%arg0: i32) -> (i32, i32) {
    %c0_i32 = arith.constant 0 : i32
    %c0_i32_0 = arith.constant 0 : i32
    return %arg0, %c0_i32 : i32, i32
  }
}

</mosaic_0001>

<bundles_post_ra>
// kernel: tpu_custom_call.1
= control target key start
LH: loop header
LB: loop body
LE: loop exit
PB: predicated region body
PF: predicated region fallthrough
CT: control target
= control target key end

     0   :  { %s1918_s0 = inlined_call_operand.vmem [shape: f32[8,2048], index: 0, kind: input, shape index: {}]   ;;  %s1919_s1 = inlined_call_operand.hbm [shape: f32[2048,128], index: 1, kind: input, shape index: {}]   ;;  %s1920_s2 = inlined_call_operand.vmem [shape: f32[1,128], index: 2, kind: input, shape index: {}]   ;;  %s1921_s3 = inlined_call_operand.vmem [shape: f32[128,32], index: 3, kind: input, shape index: {}]   ;;  %s1922_s4 = inlined_call_operand.vmem [shape: f32[1,32], index: 4, kind: input, shape index: {}]   ;;  %s1923_s5 = inlined_call_operand.vmem [shape: f32[32,1], index: 5, kind: input, shape index: {}]   ;;  %s1924_s6 = inlined_call_operand.<no memory space> [shape: f32[1,1], index: 6, kind: input, shape index: {}]   ;;  %s1925_s7 = inlined_call_operand.vmem [shape: f32[8,1], index: 7, kind: output, shape index: {}]  }
   0x1   :  { %v12_v0 = vstv %s1924_s6 }
   0x2   :  { %13 = vst [vmem:[#allocation2] sm:$0x1] %v12_v0 }
   0x3   :  { %14 = vsyncpa [#allocation4], 0  ;;  %s1740_s26 = smov [#allocation3]   ;;  %s1716_s30 = scalar_lea.hbm %s1919_s1, 32768 }
   0x4   :  { %s22_s27 = sshll.u32 %s1740_s26, 4  ;;  %p1717_p0 = scmp.ne.s32.totalorder %s1919_s1, %s1716_s30  ;;  %s23_s27 = int_to_ptr.vmem [resolvable:$true] %s22_s27 }
   0x5   :  { %p1720_p1 = scmp.lt.u32.totalorder %s1716_s30, %s1919_s1 }
   0x7   :  { %p1722_p2 = pnand %p1720_p1, %p1717_p0 }
   0x9   :  { %1725 = shalt.err (!%p1722_p2)
}
   0xa   :  { %s1726_s6 = scalar_lea.vmem %s23_s27, 32768  ;;  %p1731_p4 = scmp.lt.s32.totalorder %s23_s27, %s23_s27 }
   0xb   :  { %p1727_p3 = scmp.ne.s32.totalorder %s23_s27, %s1726_s6  ;;  %p1732_p5 = scmp.lt.s32.totalorder %s1726_s6, %s1726_s6 }
   0xd   :  { %p1733_p6 = por %p1732_p5, %p1731_p4 }
   0xf   :  { %p1734_p7 = pnand %p1733_p6, %p1727_p3 }
  0x11   :  { %1737 = shalt.err (!%p1734_p7)
}
  0x12   :  { %s1741_s12 = smov 128   ;;  %s1742_s13 = smov 8  }
  0x13   :  { %28 = dma.hbm_to_vmem [thread:$0]  %s1919_s1, 32768, %s23_s27, [#allocation4], %s1741_s12, %s1741_s12, %s1742_s13  }
  0x14   :  { %1738 = dma.done.wait [#allocation4], 32768  }
  0x15   :  { %1739 = vsyncadd [#allocation4], 4294934528  ;;  %v74_v1 = vld [vmem:[#allocation3 + $0x80] sm:$0xff]  ;;  %v75_v2 = vld [vmem:[#allocation3 + $0x88] sm:$0xff]  ;;  %vm1744_vm0 = vmmov 0   ;;  %vm988_vm2 = vcmask 261120  }
  0x16   :  { %v58_v3 = vld [vmem:[#allocation3] sm:$0xff]  ;;  %v1424_v4 = vpack.c.bf16 %v75_v2, %v74_v1  ;;  %v59_v5 = vld [vmem:[#allocation3 + $0x8] sm:$0xff]  ;;  %v76_v12 = vld [vmem:[#allocation3 + $0x90] sm:$0xff]  ;;  %vm1065_vm4 = vcmask 7168  }
  0x17   :  { %v106_v6 = vld [vmem:[#allocation3 + $0x180] sm:$0xff]  ;;  %v107_v7 = vld [vmem:[#allocation3 + $0x188] sm:$0xff]  ;;  %v1426_v8 = vpack.c.bf16 %v59_v5, %v58_v3  ;;  %v77_v14 = vld [vmem:[#allocation3 + $0x98] sm:$0xff] }
  0x18   :  { %v1456_v9 = vpack.c.bf16 %v107_v7, %v106_v6  ;;  %v90_v10 = vld [vmem:[#allocation3 + $0x100] sm:$0xff]  ;;  %v91_v11 = vld [vmem:[#allocation3 + $0x108] sm:$0xff]  ;;  %1425 = vmatprep.subr.bf16.mxu0 %v1424_v4  ;;  %v60_v15 = vld [vmem:[#allocation3 + $0x10] sm:$0xff]  ;;  %v1428_v17 = vpack.c.bf16 %v77_v14, %v76_v12 }
  0x19   :  { %v1458_v13 = vpack.c.bf16 %v91_v11, %v90_v10  ;;  %v61_v16 = vld [vmem:[#allocation3 + $0x18] sm:$0xff]  ;;  %1427 = vmatpush3.bf16.msra.mxu0 %v1426_v8  ;;  %v108_v19 = vld [vmem:[#allocation3 + $0x190] sm:$0xff]  ;;  %v78_v24 = vld [vmem:[#allocation3 + $0xa0] sm:$0xff] }
  0x1a   :  { %1457 = vmatprep.subr.bf16.mxu1 %v1456_v9  ;;  %v1430_v18 = vpack.c.bf16 %v61_v16, %v60_v15  ;;  %v109_v20 = vld [vmem:[#allocation3 + $0x198] sm:$0xff]  ;;  %v92_v21 = vld [vmem:[#allocation3 + $0x110] sm:$0xff]  ;;  %v79_v25 = vld [vmem:[#allocation3 + $0xa8] sm:$0xff]  ;;  %1429 = vmatprep.subr.bf16.mxu0 %v1428_v17 }
  0x1b   :  { %1459 = vmatpush3.bf16.msra.mxu1 %v1458_v13  ;;  %v1460_v22 = vpack.c.bf16 %v109_v20, %v108_v19  ;;  %v93_v23 = vld [vmem:[#allocation3 + $0x118] sm:$0xff]  ;;  %v1432_v27 = vpack.c.bf16 %v79_v25, %v78_v24  ;;  %v62_v28 = vld [vmem:[#allocation3 + $0x20] sm:$0xff]  ;;  %v63_v29 = vld [vmem:[#allocation3 + $0x28] sm:$0xff] }
  0x1c   :  { %v1462_v26 = vpack.c.bf16 %v93_v23, %v92_v21  ;;  %v110_v30 = vld [vmem:[#allocation3 + $0x1a0] sm:$0xff]  ;;  %v111_v31 = vld [vmem:[#allocation3 + $0x1a8] sm:$0xff]  ;;  %v1434_v34 = vpack.c.bf16 %v63_v29, %v62_v28  ;;  %v80_v36 = vld [vmem:[#allocation3 + $0xb0] sm:$0xff] }
  0x1d   :  { %1461 = vmatprep.subr.bf16.mxu1 %v1460_v22  ;;  %v94_v32 = vld [vmem:[#allocation3 + $0x120] sm:$0xff]  ;;  %v95_v33 = vld [vmem:[#allocation3 + $0x128] sm:$0xff]  ;;  %1431 = vmatpush3.bf16.msra.mxu0 %v1430_v18  ;;  %v1464_v35 = vpack.c.bf16 %v111_v31, %v110_v30  ;;  %v81_v37 = vld [vmem:[#allocation3 + $0xb8] sm:$0xff] }
  0x1e   :  { %v64_v38 = vld [vmem:[#allocation3 + $0x30] sm:$0xff]  ;;  %1433 = vmatprep.subr.bf16.mxu0 %v1432_v27  ;;  %v1466_v39 = vpack.c.bf16 %v95_v33, %v94_v32  ;;  %v1436_v40 = vpack.c.bf16 %v81_v37, %v80_v36  ;;  %v65_v41 = vld [vmem:[#allocation3 + $0x38] sm:$0xff]  ;;  %v82_v47 = vld [vmem:[#allocation3 + $0xc0] sm:$0xff] }
  0x1f   :  { %1463 = vmatpush3.bf16.msra.mxu1 %v1462_v26  ;;  %v112_v42 = vld [vmem:[#allocation3 + $0x1b0] sm:$0xff]  ;;  %v113_v43 = vld [vmem:[#allocation3 + $0x1b8] sm:$0xff]  ;;  %v83_v48 = vld [vmem:[#allocation3 + $0xc8] sm:$0xff]  ;;  %v1438_v49 = vpack.c.bf16 %v65_v41, %v64_v38 }
  0x20   :  { %1465 = vmatprep.subr.bf16.mxu1 %v1464_v35  ;;  %v1468_v44 = vpack.c.bf16 %v113_v43, %v112_v42  ;;  %v96_v45 = vld [vmem:[#allocation3 + $0x130] sm:$0xff]  ;;  %v97_v46 = vld [vmem:[#allocation3 + $0x138] sm:$0xff]  ;;  %v114_v50 = vld [vmem:[#allocation3 + $0x1c0] sm:$0xff]  ;;  %v1440_v53 = vpack.c.bf16 %v83_v48, %v82_v47 }
  0x21   :  { %1435 = vmatpush3.bf16.msra.mxu0 %v1434_v34  ;;  %v115_v51 = vld [vmem:[#allocation3 + $0x1c8] sm:$0xff]  ;;  %v1470_v52 = vpack.c.bf16 %v97_v46, %v96_v45  ;;  %v66_v54 = vld [vmem:[#allocation3 + $0x40] sm:$0xff]  ;;  %v84_v59 = vld [vmem:[#allocation3 + $0xd0] sm:$0xff] }
  0x22   :  { %1437 = vmatprep.subr.bf16.mxu0 %v1436_v40  ;;  %v67_v55 = vld [vmem:[#allocation3 + $0x48] sm:$0xff]  ;;  %v98_v56 = vld [vmem:[#allocation3 + $0x140] sm:$0xff]  ;;  %v1472_v57 = vpack.c.bf16 %v115_v51, %v114_v50  ;;  %v85_v60 = vld [vmem:[#allocation3 + $0xd8] sm:$0xff] }
  0x23   :  { %1467 = vmatpush3.bf16.msra.mxu1 %v1466_v39  ;;  %v99_v58 = vld [vmem:[#allocation3 + $0x148] sm:$0xff]  ;;  %v116_v61 = vld [vmem:[#allocation3 + $0x1d0] sm:$0xff]  ;;  %v117_v62 = vld [vmem:[#allocation3 + $0x1d8] sm:$0xff]  ;;  %v1442_v63 = vpack.c.bf16 %v67_v55, %v66_v54  ;;  %v1444_v1 = vpack.c.bf16 %v85_v60, %v84_v59 }
  0x24   :  { %1469 = vmatprep.subr.bf16.mxu1 %v1468_v44  ;;  %v1474_v0 = vpack.c.bf16 %v99_v58, %v98_v56  ;;  %v68_v2 = vld [vmem:[#allocation3 + $0x50] sm:$0xff]  ;;  %v69_v3 = vld [vmem:[#allocation3 + $0x58] sm:$0xff]  ;;  %v1476_v5 = vpack.c.bf16 %v117_v62, %v116_v61  ;;  %v86_v7 = vld [vmem:[#allocation3 + $0xe0] sm:$0xff] }
  0x25   :  { %1439 = vmatpush3.bf16.msra.mxu0 %v1438_v49  ;;  %v100_v4 = vld [vmem:[#allocation3 + $0x150] sm:$0xff]  ;;  %v101_v6 = vld [vmem:[#allocation3 + $0x158] sm:$0xff]  ;;  %v87_v8 = vld [vmem:[#allocation3 + $0xe8] sm:$0xff]  ;;  %v1446_v11 = vpack.c.bf16 %v69_v3, %v68_v2 }
  0x26   :  { %1441 = vmatprep.subr.bf16.mxu0 %v1440_v53  ;;  %v118_v9 = vld [vmem:[#allocation3 + $0x1e0] sm:$0xff]  ;;  %v119_v10 = vld [vmem:[#allocation3 + $0x1e8] sm:$0xff]  ;;  %v1478_v14 = vpack.c.bf16 %v101_v6, %v100_v4  ;;  %v1448_v15 = vpack.c.bf16 %v87_v8, %v86_v7  ;;  %v88_v20 = vld [vmem:[#allocation3 + $0xf0] sm:$0xff] }
  0x27   :  { %1471 = vmatpush3.bf16.msra.mxu1 %v1470_v52  ;;  %v70_v12 = vld [vmem:[#allocation3 + $0x60] sm:$0xff]  ;;  %v71_v13 = vld [vmem:[#allocation3 + $0x68] sm:$0xff]  ;;  %v1480_v19 = vpack.c.bf16 %v119_v10, %v118_v9  ;;  %v89_v21 = vld [vmem:[#allocation3 + $0xf8] sm:$0xff] }
  0x28   :  { %1473 = vmatprep.subr.bf16.mxu1 %v1472_v57  ;;  %v102_v16 = vld [vmem:[#allocation3 + $0x160] sm:$0xff]  ;;  %v103_v17 = vld [vmem:[#allocation3 + $0x168] sm:$0xff]  ;;  %v45_v22 = vld [vmem:[%s1918_s0 + $0x18] sm:$0xff]  ;;  %v1450_v25 = vpack.c.bf16 %v71_v13, %v70_v12  ;;  %v1452_v27 = vpack.c.bf16 %v89_v21, %v88_v20 }
  0x29   :  { %1443 = vmatpush3.bf16.msra.mxu0 %v1442_v63  ;;  %v43_v18 = vld [vmem:[%s1918_s0 + $0x8] sm:$0xff]  ;;  %v120_v23 = vld [vmem:[#allocation3 + $0x1f0] sm:$0xff]  ;;  %v121_v24 = vld [vmem:[#allocation3 + $0x1f8] sm:$0xff]  ;;  %455 = vmatprep.mubr.f32.mxu1 %v45_v22  ;;  %v1482_v26 = vpack.c.bf16 %v103_v17, %v102_v16 }
  0x2a   :  { %1445 = vmatprep.subr.bf16.mxu0 %v1444_v1  ;;  %385 = vmatprep.mubr.f32.mxu0 %v43_v18  ;;  %v72_v28 = vld [vmem:[#allocation3 + $0x70] sm:$0xff]  ;;  %v73_v29 = vld [vmem:[#allocation3 + $0x78] sm:$0xff]  ;;  %v1484_v31 = vpack.c.bf16 %v121_v24, %v120_v23  ;;  %v138_v33 = vld [vmem:[#allocation3 + $0x280] sm:$0xff] }
  0x2b   :  { %1475 = vmatpush3.bf16.msra.mxu1 %v1474_v0  ;;  %v104_v30 = vld [vmem:[#allocation3 + $0x170] sm:$0xff]  ;;  %v105_v32 = vld [vmem:[#allocation3 + $0x178] sm:$0xff]  ;;  %v139_v34 = vld [vmem:[#allocation3 + $0x288] sm:$0xff]  ;;  %v1454_v37 = vpack.c.bf16 %v73_v29, %v72_v28 }
  0x2c   :  { %1477 = vmatprep.subr.bf16.mxu1 %v1476_v5  ;;  %v170_v35 = vld [vmem:[#allocation3 + $0x380] sm:$0xff]  ;;  %v171_v36 = vld [vmem:[#allocation3 + $0x388] sm:$0xff]  ;;  %v1486_v38 = vpack.c.bf16 %v105_v32, %v104_v30  ;;  %v1488_v39 = vpack.c.bf16 %v139_v34, %v138_v33  ;;  %v140_v45 = vld [vmem:[#allocation3 + $0x290] sm:$0xff] }
  0x2d   :  { %1447 = vmatpush3.bf16.msra.mxu0 %v1446_v11  ;;  %v122_v40 = vld [vmem:[#allocation3 + $0x200] sm:$0xff]  ;;  %v123_v41 = vld [vmem:[#allocation3 + $0x208] sm:$0xff]  ;;  %v1520_v43 = vpack.c.bf16 %v171_v36, %v170_v35  ;;  %v141_v46 = vld [vmem:[#allocation3 + $0x298] sm:$0xff] }
  0x2e   :  { %1449 = vmatprep.subr.bf16.mxu0 %v1448_v15  ;;  %v154_v42 = vld [vmem:[#allocation3 + $0x300] sm:$0xff]  ;;  %v155_v44 = vld [vmem:[#allocation3 + $0x308] sm:$0xff]  ;;  %v172_v47 = vld [vmem:[#allocation3 + $0x390] sm:$0xff]  ;;  %v1490_v50 = vpack.c.bf16 %v123_v41, %v122_v40  ;;  %v1492_v53 = vpack.c.bf16 %v141_v46, %v140_v45 }
  0x2f   :  { %1479 = vmatpush3.bf16.msra.mxu1 %v1478_v14  ;;  %v173_v48 = vld [vmem:[#allocation3 + $0x398] sm:$0xff]  ;;  %v44_v51 = vld [vmem:[%s1918_s0 + $0x10] sm:$0xff]  ;;  %v1522_v52 = vpack.c.bf16 %v155_v44, %v154_v42  ;;  %v142_v59 = vld [vmem:[#allocation3 + $0x2a0] sm:$0xff] }
  0x30   :  { %1481 = vmatprep.subr.bf16.mxu1 %v1480_v19  ;;  %v42_v49 = vld [vmem:[%s1918_s0] sm:$0xff]  ;;  %v124_v54 = vld [vmem:[#allocation3 + $0x210] sm:$0xff]  ;;  %v1524_v57 = vpack.c.bf16 %v173_v48, %v172_v47  ;;  %v143_v60 = vld [vmem:[#allocation3 + $0x2a8] sm:$0xff] }
  0x31   :  { %1451 = vmatpush3.bf16.msra.mxu0 %v1450_v25  ;;  %v125_v55 = vld [vmem:[#allocation3 + $0x218] sm:$0xff]  ;;  %v156_v56 = vld [vmem:[#allocation3 + $0x310] sm:$0xff]  ;;  %v174_v61 = vld [vmem:[#allocation3 + $0x3a0] sm:$0xff]  ;;  %v1496_v1 = vpack.c.bf16 %v143_v60, %v142_v59 }
  0x32   :  { %1453 = vmatprep.subr.bf16.mxu0 %v1452_v27  ;;  %v157_v58 = vld [vmem:[#allocation3 + $0x318] sm:$0xff]  ;;  %v175_v62 = vld [vmem:[#allocation3 + $0x3a8] sm:$0xff]  ;;  %v1494_v63 = vpack.c.bf16 %v125_v55, %v124_v54  ;;  %v126_v2 = vld [vmem:[#allocation3 + $0x220] sm:$0xff] }
  0x33   :  { %1483 = vmatpush3.bf16.msra.mxu1 %v1482_v26  ;;  %v1526_v0 = vpack.c.bf16 %v157_v58, %v156_v56  ;;  %v127_v3 = vld [vmem:[#allocation3 + $0x228] sm:$0xff]  ;;  %v158_v4 = vld [vmem:[#allocation3 + $0x320] sm:$0xff]  ;;  %v1528_v5 = vpack.c.bf16 %v175_v62, %v174_v61  ;;  %v144_v7 = vld [vmem:[#allocation3 + $0x2b0] sm:$0xff] }
  0x34   :  { %1485 = vmatprep.subr.bf16.mxu1 %v1484_v31  ;;  %v159_v6 = vld [vmem:[#allocation3 + $0x328] sm:$0xff]  ;;  %v145_v8 = vld [vmem:[#allocation3 + $0x2b8] sm:$0xff]  ;;  %v176_v9 = vld [vmem:[#allocation3 + $0x3b0] sm:$0xff]  ;;  %v1498_v11 = vpack.c.bf16 %v127_v3, %v126_v2 }
  0x35   :  { %1455 = vmatpush3.bf16.msra.mxu0 %v1454_v37  ;;  %v177_v10 = vld [vmem:[#allocation3 + $0x3b8] sm:$0xff]  ;;  %v1530_v12 = vpack.c.bf16 %v159_v6, %v158_v4  ;;  %v1500_v13 = vpack.c.bf16 %v145_v8, %v144_v7  ;;  %v128_v14 = vld [vmem:[#allocation3 + $0x230] sm:$0xff]  ;;  %v146_v19 = vld [vmem:[#allocation3 + $0x2c0] sm:$0xff] }
  0x36   :  { %1489 = vmatprep.subr.bf16.mxu0 %v1488_v39  ;;  %v129_v15 = vld [vmem:[#allocation3 + $0x238] sm:$0xff]  ;;  %v160_v16 = vld [vmem:[#allocation3 + $0x330] sm:$0xff]  ;;  %v1532_v17 = vpack.c.bf16 %v177_v10, %v176_v9  ;;  %v147_v20 = vld [vmem:[#allocation3 + $0x2c8] sm:$0xff] }
  0x37   :  { %1487 = vmatpush3.bf16.msra.mxu1 %v1486_v38  ;;  %v161_v18 = vld [vmem:[#allocation3 + $0x338] sm:$0xff]  ;;  %v178_v21 = vld [vmem:[#allocation3 + $0x3c0] sm:$0xff]  ;;  %v179_v22 = vld [vmem:[#allocation3 + $0x3c8] sm:$0xff]  ;;  %v1502_v23 = vpack.c.bf16 %v129_v15, %v128_v14  ;;  %v1504_v27 = vpack.c.bf16 %v147_v20, %v146_v19 }
  0x38   :  { %1521 = vmatprep.subr.bf16.mxu1 %v1520_v43  ;;  %386 = vmatmul.mubr.f32.vlgmr.msra.gmra.mrb[0].mxu0 %v42_v49  ;;  %v130_v24 = vld [vmem:[#allocation3 + $0x240] sm:$0xff]  ;;  %v1534_v26 = vpack.c.bf16 %v161_v18, %v160_v16  ;;  %v131_v28 = vld [vmem:[#allocation3 + $0x248] sm:$0xff]  ;;  %v49_v30 = vld [vmem:[%s1918_s0 + $0x38] sm:$0xff]  ;;  %v1536_v31 = vpack.c.bf16 %v179_v22, %v178_v21 }
  0x39   :  { %1491 = vmatpush3.bf16.msra.mxu0 %v1490_v50  ;;  %v47_v25 = vld [vmem:[%s1918_s0 + $0x28] sm:$0xff]  ;;  %v148_v33 = vld [vmem:[#allocation3 + $0x2d0] sm:$0xff]  ;;  %v149_v34 = vld [vmem:[#allocation3 + $0x2d8] sm:$0xff]  ;;  %v1506_v37 = vpack.c.bf16 %v131_v28, %v130_v24 }
  0x3a   :  { %456 = vmatmul.mubr.f32.vlgmr.msra.gmra.mrb[0].mxu1 %v44_v51  ;;  %1493 = vmatprep.subr.bf16.mxu0 %v1492_v53  ;;  %v162_v29 = vld [vmem:[#allocation3 + $0x340] sm:$0xff]  ;;  %v163_v32 = vld [vmem:[#allocation3 + $0x348] sm:$0xff]  ;;  %v180_v35 = vld [vmem:[#allocation3 + $0x3d0] sm:$0xff]  ;;  %v1508_v39 = vpack.c.bf16 %v149_v34, %v148_v33 }
  0x3b   :  { %1523 = vmatpush3.bf16.msra.mxu1 %v1522_v52  ;;  %525 = vmatprep.mubr.f32.mxu0 %v47_v25  ;;  %v181_v36 = vld [vmem:[#allocation3 + $0x3d8] sm:$0xff]  ;;  %v1538_v38 = vpack.c.bf16 %v163_v32, %v162_v29  ;;  %v132_v40 = vld [vmem:[#allocation3 + $0x250] sm:$0xff]  ;;  %v150_v45 = vld [vmem:[#allocation3 + $0x2e0] sm:$0xff] }
  0x3c   :  { %1525 = vmatprep.subr.bf16.mxu1 %v1524_v57  ;;  %595 = vmatprep.mubr.f32.mxu1 %v49_v30  ;;  %v133_v41 = vld [vmem:[#allocation3 + $0x258] sm:$0xff]  ;;  %v164_v42 = vld [vmem:[#allocation3 + $0x350] sm:$0xff]  ;;  %v1540_v43 = vpack.c.bf16 %v181_v36, %v180_v35  ;;  %v151_v46 = vld [vmem:[#allocation3 + $0x2e8] sm:$0xff] }
  0x3d   :  { %1495 = vmatpush3.bf16.msra.mxu0 %v1494_v63  ;;  %v165_v44 = vld [vmem:[#allocation3 + $0x358] sm:$0xff]  ;;  %v182_v47 = vld [vmem:[#allocation3 + $0x3e0] sm:$0xff]  ;;  %v183_v48 = vld [vmem:[#allocation3 + $0x3e8] sm:$0xff]  ;;  %v1510_v49 = vpack.c.bf16 %v133_v41, %v132_v40  ;;  %v1512_v51 = vpack.c.bf16 %v151_v46, %v150_v45 }
  0x3e   :  { %1497 = vmatprep.subr.bf16.mxu0 %v1496_v1  ;;  %v1542_v50 = vpack.c.bf16 %v165_v44, %v164_v42  ;;  %v134_v52 = vld [vmem:[#allocation3 + $0x260] sm:$0xff]  ;;  %v135_v53 = vld [vmem:[#allocation3 + $0x268] sm:$0xff]  ;;  %v1544_v55 = vpack.c.bf16 %v183_v48, %v182_v47  ;;  %v152_v57 = vld [vmem:[#allocation3 + $0x2f0] sm:$0xff] }
  0x3f   :  { %1527 = vmatpush3.bf16.msra.mxu1 %v1526_v0  ;;  %v166_v54 = vld [vmem:[#allocation3 + $0x360] sm:$0xff]  ;;  %v167_v56 = vld [vmem:[#allocation3 + $0x368] sm:$0xff]  ;;  %v153_v58 = vld [vmem:[#allocation3 + $0x2f8] sm:$0xff]  ;;  %v1514_v61 = vpack.c.bf16 %v135_v53, %v134_v52 }
  0x40   :  { %1529 = vmatprep.subr.bf16.mxu1 %v1528_v5  ;;  %v184_v59 = vld [vmem:[#allocation3 + $0x3f0] sm:$0xff]  ;;  %v185_v60 = vld [vmem:[#allocation3 + $0x3f8] sm:$0xff]  ;;  %v1546_v62 = vpack.c.bf16 %v167_v56, %v166_v54  ;;  %v1516_v63 = vpack.c.bf16 %v153_v58, %v152_v57  ;;  %v202_v5 = vld [vmem:[#allocation3 + $0x480] sm:$0xff] }
  0x41   :  { %1499 = vmatpush3.bf16.msra.mxu0 %v1498_v11  ;;  %v136_v0 = vld [vmem:[#allocation3 + $0x270] sm:$0xff]  ;;  %v137_v1 = vld [vmem:[#allocation3 + $0x278] sm:$0xff]  ;;  %v1548_v3 = vpack.c.bf16 %v185_v60, %v184_v59  ;;  %v203_v6 = vld [vmem:[#allocation3 + $0x488] sm:$0xff] }
  0x42   :  { %1501 = vmatprep.subr.bf16.mxu0 %v1500_v13  ;;  %v168_v2 = vld [vmem:[#allocation3 + $0x370] sm:$0xff]  ;;  %v169_v4 = vld [vmem:[#allocation3 + $0x378] sm:$0xff]  ;;  %v234_v7 = vld [vmem:[#allocation3 + $0x580] sm:$0xff]  ;;  %v1518_v9 = vpack.c.bf16 %v137_v1, %v136_v0  ;;  %v1552_v11 = vpack.c.bf16 %v203_v6, %v202_v5 }
  0x43   :  { %1531 = vmatpush3.bf16.msra.mxu1 %v1530_v12  ;;  %v235_v8 = vld [vmem:[#allocation3 + $0x588] sm:$0xff]  ;;  %v1550_v10 = vpack.c.bf16 %v169_v4, %v168_v2  ;;  %v186_v12 = vld [vmem:[#allocation3 + $0x400] sm:$0xff]  ;;  %v205_v18 = vld [vmem:[#allocation3 + $0x498] sm:$0xff] }
  0x44   :  { %1533 = vmatprep.subr.bf16.mxu1 %v1532_v17  ;;  %v187_v13 = vld [vmem:[#allocation3 + $0x408] sm:$0xff]  ;;  %v218_v14 = vld [vmem:[#allocation3 + $0x500] sm:$0xff]  ;;  %v1584_v15 = vpack.c.bf16 %v235_v8, %v234_v7  ;;  %v204_v17 = vld [vmem:[#allocation3 + $0x490] sm:$0xff] }
  0x45   :  { %1503 = vmatpush3.bf16.msra.mxu0 %v1502_v23  ;;  %v219_v16 = vld [vmem:[#allocation3 + $0x508] sm:$0xff]  ;;  %v236_v19 = vld [vmem:[#allocation3 + $0x590] sm:$0xff]  ;;  %v237_v20 = vld [vmem:[#allocation3 + $0x598] sm:$0xff]  ;;  %v1554_v22 = vpack.c.bf16 %v187_v13, %v186_v12  ;;  %v1556_v25 = vpack.c.bf16 %v205_v18, %v204_v17 }
  0x46   :  { %1505 = vmatprep.subr.bf16.mxu0 %v1504_v27  ;;  %v46_v21 = vld [vmem:[%s1918_s0 + $0x20] sm:$0xff]  ;;  %v48_v23 = vld [vmem:[%s1918_s0 + $0x30] sm:$0xff]  ;;  %v1586_v24 = vpack.c.bf16 %v219_v16, %v218_v14  ;;  %v1588_v29 = vpack.c.bf16 %v237_v20, %v236_v19  ;;  %v51_v35 = vld [vmem:[%s1918_s0 + $0x48] sm:$0xff] }
  0x47   :  { %1535 = vmatpush3.bf16.msra.mxu1 %v1534_v26  ;;  %v188_v26 = vld [vmem:[#allocation3 + $0x410] sm:$0xff]  ;;  %v189_v27 = vld [vmem:[#allocation3 + $0x418] sm:$0xff]  ;;  %v207_v32 = vld [vmem:[#allocation3 + $0x4a8] sm:$0xff] }
  0x48   :  { %1537 = vmatprep.subr.bf16.mxu1 %v1536_v31  ;;  %v220_v28 = vld [vmem:[#allocation3 + $0x510] sm:$0xff]  ;;  %v221_v30 = vld [vmem:[#allocation3 + $0x518] sm:$0xff]  ;;  %v206_v31 = vld [vmem:[#allocation3 + $0x4a0] sm:$0xff]  ;;  %v1558_v36 = vpack.c.bf16 %v189_v27, %v188_v26 }
  0x49   :  { %1507 = vmatpush3.bf16.msra.mxu0 %v1506_v37  ;;  %v238_v33 = vld [vmem:[#allocation3 + $0x5a0] sm:$0xff]  ;;  %v239_v34 = vld [vmem:[#allocation3 + $0x5a8] sm:$0xff]  ;;  %v53_v37 = vld [vmem:[%s1918_s0 + $0x58] sm:$0xff] }
  0x4a   :  { %1509 = vmatprep.subr.bf16.mxu0 %v1508_v39  ;;  %v1560_v39 = vpack.c.bf16 %v207_v32, %v206_v31  ;;  %v190_v40 = vld [vmem:[#allocation3 + $0x420] sm:$0xff]  ;;  %v191_v41 = vld [vmem:[#allocation3 + $0x428] sm:$0xff]  ;;  %v208_v45 = vld [vmem:[#allocation3 + $0x4b0] sm:$0xff] }
  0x4b   :  { %1539 = vmatpush3.bf16.msra.mxu1 %v1538_v38  ;;  %v1590_v38 = vpack.c.bf16 %v221_v30, %v220_v28  ;;  %v222_v42 = vld [vmem:[#allocation3 + $0x520] sm:$0xff]  ;;  %v223_v44 = vld [vmem:[#allocation3 + $0x528] sm:$0xff]  ;;  %v209_v46 = vld [vmem:[#allocation3 + $0x4b8] sm:$0xff] }
  0x4c   :  { %1541 = vmatprep.subr.bf16.mxu1 %v1540_v43  ;;  %v1592_v43 = vpack.c.bf16 %v239_v34, %v238_v33  ;;  %v240_v47 = vld [vmem:[#allocation3 + $0x5b0] sm:$0xff]  ;;  %v241_v48 = vld [vmem:[#allocation3 + $0x5b8] sm:$0xff]  ;;  %v210_v57 = vld [vmem:[#allocation3 + $0x4c0] sm:$0xff] }
  0x4d   :  { %1511 = vmatpush3.bf16.msra.mxu0 %v1510_v49  ;;  %v1562_v49 = vpack.c.bf16 %v191_v41, %v190_v40  ;;  %v192_v52 = vld [vmem:[#allocation3 + $0x430] sm:$0xff]  ;;  %v193_v53 = vld [vmem:[#allocation3 + $0x438] sm:$0xff]  ;;  %v211_v58 = vld [vmem:[#allocation3 + $0x4c8] sm:$0xff] }
  0x4e   :  { %1513 = vmatprep.subr.bf16.mxu0 %v1512_v51  ;;  %v1564_v51 = vpack.c.bf16 %v209_v46, %v208_v45  ;;  %v224_v54 = vld [vmem:[#allocation3 + $0x530] sm:$0xff]  ;;  %v225_v56 = vld [vmem:[#allocation3 + $0x538] sm:$0xff]  ;;  %v242_v59 = vld [vmem:[#allocation3 + $0x5c0] sm:$0xff] }
  0x4f   :  { %1543 = vmatpush3.bf16.msra.mxu1 %v1542_v50  ;;  %v1594_v50 = vpack.c.bf16 %v223_v44, %v222_v42  ;;  %v243_v60 = vld [vmem:[#allocation3 + $0x5c8] sm:$0xff]  ;;  %v194_v0 = vld [vmem:[#allocation3 + $0x440] sm:$0xff]  ;;  %v212_v5 = vld [vmem:[#allocation3 + $0x4d0] sm:$0xff] }
  0x50   :  { %1545 = vmatprep.subr.bf16.mxu1 %v1544_v55  ;;  %v1596_v55 = vpack.c.bf16 %v241_v48, %v240_v47  ;;  %v195_v1 = vld [vmem:[#allocation3 + $0x448] sm:$0xff]  ;;  %v226_v2 = vld [vmem:[#allocation3 + $0x540] sm:$0xff]  ;;  %v213_v6 = vld [vmem:[#allocation3 + $0x4d8] sm:$0xff] }
  0x51   :  { %1515 = vmatpush3.bf16.msra.mxu0 %v1514_v61  ;;  %v1566_v61 = vpack.c.bf16 %v193_v53, %v192_v52  ;;  %v227_v4 = vld [vmem:[#allocation3 + $0x548] sm:$0xff]  ;;  %v244_v7 = vld [vmem:[#allocation3 + $0x5d0] sm:$0xff]  ;;  %v245_v8 = vld [vmem:[#allocation3 + $0x5d8] sm:$0xff] }
  0x52   :  { %1517 = vmatprep.subr.bf16.mxu0 %v1516_v63  ;;  %v1568_v63 = vpack.c.bf16 %v211_v58, %v210_v57  ;;  %v196_v12 = vld [vmem:[#allocation3 + $0x450] sm:$0xff]  ;;  %v197_v13 = vld [vmem:[#allocation3 + $0x458] sm:$0xff]  ;;  %v214_v17 = vld [vmem:[#allocation3 + $0x4e0] sm:$0xff] }
  0x53   :  { %1547 = vmatpush3.bf16.msra.mxu1 %v1546_v62  ;;  %v1598_v62 = vpack.c.bf16 %v225_v56, %v224_v54  ;;  %v228_v14 = vld [vmem:[#allocation3 + $0x550] sm:$0xff]  ;;  %v229_v16 = vld [vmem:[#allocation3 + $0x558] sm:$0xff]  ;;  %v215_v18 = vld [vmem:[#allocation3 + $0x4e8] sm:$0xff] }
  0x54   :  { %1549 = vmatprep.subr.bf16.mxu1 %v1548_v3  ;;  %v1600_v3 = vpack.c.bf16 %v243_v60, %v242_v59  ;;  %v246_v19 = vld [vmem:[#allocation3 + $0x5e0] sm:$0xff]  ;;  %v247_v20 = vld [vmem:[#allocation3 + $0x5e8] sm:$0xff]  ;;  %v217_v30 = vld [vmem:[#allocation3 + $0x4f8] sm:$0xff] }
  0x55   :  { %1519 = vmatpush3.bf16.msra.mxu0 %v1518_v9  ;;  %v1570_v9 = vpack.c.bf16 %v195_v1, %v194_v0  ;;  %v230_v26 = vld [vmem:[#allocation3 + $0x560] sm:$0xff]  ;;  %v1608_v27 = vpack.c.bf16 %v247_v20, %v246_v19  ;;  %v231_v28 = vld [vmem:[#allocation3 + $0x568] sm:$0xff]  ;;  %v248_v31 = vld [vmem:[#allocation3 + $0x5f0] sm:$0xff] }
  0x56   :  { %1553 = vmatprep.subr.bf16.mxu0 %v1552_v11  ;;  %v1572_v11 = vpack.c.bf16 %v213_v6, %v212_v5  ;;  %v249_v32 = vld [vmem:[#allocation3 + $0x5f8] sm:$0xff]  ;;  %v1610_v34 = vpack.c.bf16 %v231_v28, %v230_v26  ;;  %v266_v41 = vld [vmem:[#allocation3 + $0x680] sm:$0xff]  ;;  %v267_v42 = vld [vmem:[#allocation3 + $0x688] sm:$0xff] }
  0x57   :  { %1551 = vmatpush3.bf16.msra.mxu1 %v1550_v10  ;;  %v1602_v10 = vpack.c.bf16 %v227_v4, %v226_v2  ;;  %v233_v40 = vld [vmem:[#allocation3 + $0x578] sm:$0xff]  ;;  %v299_v44 = vld [vmem:[#allocation3 + $0x788] sm:$0xff]  ;;  %v1616_v47 = vpack.c.bf16 %v267_v42, %v266_v41  ;;  %v250_v48 = vld [vmem:[#allocation3 + $0x600] sm:$0xff] }
  0x58   :  { %1585 = vmatprep.subr.bf16.mxu1 %v1584_v15  ;;  %526 = vmatmul.mubr.f32.vlgmr.msra.gmra.mrb[2].mxu0 %v46_v21  ;;  %v1604_v15 = vpack.c.bf16 %v245_v8, %v244_v7  ;;  %v1574_v21 = vpack.c.bf16 %v197_v13, %v196_v12  ;;  %v283_v52 = vld [vmem:[#allocation3 + $0x708] sm:$0xff]  ;;  %v268_v53 = vld [vmem:[#allocation3 + $0x690] sm:$0xff]  ;;  %v269_v54 = vld [vmem:[#allocation3 + $0x698] sm:$0xff] }
  0x59   :  { %1555 = vmatpush3.bf16.msra.mxu0 %v1554_v22  ;;  %665 = vmatprep.mubr.f32.mxu0 %v51_v35  ;;  %v1606_v22 = vpack.c.bf16 %v229_v16, %v228_v14  ;;  %v301_v56 = vld [vmem:[#allocation3 + $0x798] sm:$0xff]  ;;  %v52_v59 = vld [vmem:[%s1918_s0 + $0x50] sm:$0xff]  ;;  %v302_v5 = vld [vmem:[#allocation3 + $0x7a0] sm:$0xff] }
  0x5a   :  { %596 = vmatmul.mubr.f32.vlgmr.msra.gmra.mrb[2].mxu1 %v48_v23  ;;  %1557 = vmatprep.subr.bf16.mxu0 %v1556_v25  ;;  %v1576_v23 = vpack.c.bf16 %v215_v18, %v214_v17  ;;  %v199_v25 = vld [vmem:[#allocation3 + $0x468] sm:$0xff]  ;;  %v50_v57 = vld [vmem:[%s1918_s0 + $0x40] sm:$0xff]  ;;  %v284_v0 = vld [vmem:[#allocation3 + $0x710] sm:$0xff] }
  0x5b   :  { %1587 = vmatpush3.bf16.msra.mxu1 %v1586_v24  ;;  %735 = vmatprep.mubr.f32.mxu1 %v53_v37  ;;  %v198_v24 = vld [vmem:[#allocation3 + $0x460] sm:$0xff]  ;;  %v201_v37 = vld [vmem:[#allocation3 + $0x478] sm:$0xff]  ;;  %v271_v4 = vld [vmem:[#allocation3 + $0x6a8] sm:$0xff] }
  0x5c   :  { %1589 = vmatprep.subr.bf16.mxu1 %v1588_v29  ;;  %v216_v29 = vld [vmem:[#allocation3 + $0x4f0] sm:$0xff]  ;;  %v1578_v33 = vpack.c.bf16 %v199_v25, %v198_v24  ;;  %v285_v2 = vld [vmem:[#allocation3 + $0x718] sm:$0xff]  ;;  %v303_v6 = vld [vmem:[#allocation3 + $0x7a8] sm:$0xff] }
  0x5d   :  { %1559 = vmatpush3.bf16.msra.mxu0 %v1558_v36  ;;  %v1580_v35 = vpack.c.bf16 %v217_v30, %v216_v29  ;;  %v200_v36 = vld [vmem:[#allocation3 + $0x470] sm:$0xff]  ;;  %v55_v7 = vld [vmem:[%s1918_s0 + $0x68] sm:$0xff]  ;;  %v273_v18 = vld [vmem:[#allocation3 + $0x6b8] sm:$0xff] }
  0x5e   :  { %1561 = vmatprep.subr.bf16.mxu0 %v1560_v39  ;;  %v1612_v39 = vpack.c.bf16 %v249_v32, %v248_v31  ;;  %v1582_v45 = vpack.c.bf16 %v201_v37, %v200_v36  ;;  %v254_v12 = vld [vmem:[#allocation3 + $0x620] sm:$0xff]  ;;  %v255_v13 = vld [vmem:[#allocation3 + $0x628] sm:$0xff]  ;;  %v272_v17 = vld [vmem:[#allocation3 + $0x6b0] sm:$0xff] }
  0x5f   :  { %1591 = vmatpush3.bf16.msra.mxu1 %v1590_v38  ;;  %v232_v38 = vld [vmem:[#allocation3 + $0x570] sm:$0xff]  ;;  %v286_v14 = vld [vmem:[#allocation3 + $0x720] sm:$0xff]  ;;  %v287_v16 = vld [vmem:[#allocation3 + $0x728] sm:$0xff] }
  0x60   :  { %1593 = vmatprep.subr.bf16.mxu1 %v1592_v43  ;;  %v298_v43 = vld [vmem:[#allocation3 + $0x780] sm:$0xff]  ;;  %v1614_v46 = vpack.c.bf16 %v233_v40, %v232_v38  ;;  %v304_v19 = vld [vmem:[#allocation3 + $0x7b0] sm:$0xff]  ;;  %v305_v20 = vld [vmem:[#allocation3 + $0x7b8] sm:$0xff] }
  0x61   :  { %1563 = vmatpush3.bf16.msra.mxu0 %v1562_v49  ;;  %v251_v49 = vld [vmem:[#allocation3 + $0x608] sm:$0xff]  ;;  %v256_v24 = vld [vmem:[#allocation3 + $0x630] sm:$0xff]  ;;  %v257_v25 = vld [vmem:[#allocation3 + $0x638] sm:$0xff] }
  0x62   :  { %1565 = vmatprep.subr.bf16.mxu0 %v1564_v51  ;;  %v1648_v51 = vpack.c.bf16 %v299_v44, %v298_v43  ;;  %v1618_v58 = vpack.c.bf16 %v251_v49, %v250_v48  ;;  %v288_v26 = vld [vmem:[#allocation3 + $0x730] sm:$0xff]  ;;  %v289_v28 = vld [vmem:[#allocation3 + $0x738] sm:$0xff]  ;;  %v274_v29 = vld [vmem:[#allocation3 + $0x6c0] sm:$0xff] }
  0x63   :  { %1595 = vmatpush3.bf16.msra.mxu1 %v1594_v50  ;;  %v282_v50 = vld [vmem:[#allocation3 + $0x700] sm:$0xff]  ;;  %v275_v30 = vld [vmem:[#allocation3 + $0x6c8] sm:$0xff]  ;;  %v276_v41 = vld [vmem:[#allocation3 + $0x6d0] sm:$0xff] }
  0x64   :  { %1597 = vmatprep.subr.bf16.mxu1 %v1596_v55  ;;  %v300_v55 = vld [vmem:[#allocation3 + $0x790] sm:$0xff]  ;;  %v1650_v60 = vpack.c.bf16 %v283_v52, %v282_v50  ;;  %v306_v31 = vld [vmem:[#allocation3 + $0x7c0] sm:$0xff]  ;;  %v307_v32 = vld [vmem:[#allocation3 + $0x7c8] sm:$0xff] }
  0x65   :  { %1567 = vmatpush3.bf16.msra.mxu0 %v1566_v61  ;;  %v1620_v61 = vpack.c.bf16 %v269_v54, %v268_v53  ;;  %v1652_v1 = vpack.c.bf16 %v301_v56, %v300_v55  ;;  %v258_v36 = vld [vmem:[#allocation3 + $0x640] sm:$0xff]  ;;  %v259_v37 = vld [vmem:[#allocation3 + $0x648] sm:$0xff]  ;;  %v277_v42 = vld [vmem:[#allocation3 + $0x6d8] sm:$0xff] }
  0x66   :  { %1569 = vmatprep.subr.bf16.mxu0 %v1568_v63  ;;  %v253_v63 = vld [vmem:[#allocation3 + $0x618] sm:$0xff]  ;;  %v290_v38 = vld [vmem:[#allocation3 + $0x740] sm:$0xff]  ;;  %v291_v40 = vld [vmem:[#allocation3 + $0x748] sm:$0xff] }
  0x67   :  { %1599 = vmatpush3.bf16.msra.mxu1 %v1598_v62  ;;  %v252_v62 = vld [vmem:[#allocation3 + $0x610] sm:$0xff]  ;;  %v309_v44 = vld [vmem:[#allocation3 + $0x7d8] sm:$0xff]  ;;  %v278_v53 = vld [vmem:[#allocation3 + $0x6e0] sm:$0xff] }
  0x68   :  { %1601 = vmatprep.subr.bf16.mxu1 %v1600_v3  ;;  %v270_v3 = vld [vmem:[#allocation3 + $0x6a0] sm:$0xff]  ;;  %v1622_v8 = vpack.c.bf16 %v253_v63, %v252_v62  ;;  %v308_v43 = vld [vmem:[#allocation3 + $0x7d0] sm:$0xff]  ;;  %v261_v49 = vld [vmem:[#allocation3 + $0x658] sm:$0xff] }
  0x69   :  { %1571 = vmatpush3.bf16.msra.mxu0 %v1570_v9  ;;  %v57_v9 = vld [vmem:[%s1918_s0 + $0x78] sm:$0xff]  ;;  %v279_v54 = vld [vmem:[#allocation3 + $0x6e8] sm:$0xff]  ;;  %v310_v55 = vld [vmem:[#allocation3 + $0x7e0] sm:$0xff] }
  0x6a   :  { %1573 = vmatprep.subr.bf16.mxu0 %v1572_v11  ;;  %v1624_v11 = vpack.c.bf16 %v271_v4, %v270_v3  ;;  %v260_v48 = vld [vmem:[#allocation3 + $0x650] sm:$0xff]  ;;  %v293_v52 = vld [vmem:[#allocation3 + $0x758] sm:$0xff]  ;;  %v311_v56 = vld [vmem:[#allocation3 + $0x7e8] sm:$0xff] }
  0x6b   :  { %1603 = vmatpush3.bf16.msra.mxu1 %v1602_v10  ;;  %v1654_v10 = vpack.c.bf16 %v285_v2, %v284_v0  ;;  %v292_v50 = vld [vmem:[#allocation3 + $0x750] sm:$0xff]  ;;  %v294_v62 = vld [vmem:[#allocation3 + $0x760] sm:$0xff]  ;;  %v1672_v63 = vpack.c.bf16 %v311_v56, %v310_v55  ;;  %v295_v0 = vld [vmem:[#allocation3 + $0x768] sm:$0xff] }
  0x6c   :  { %1605 = vmatprep.subr.bf16.mxu1 %v1604_v15  ;;  %v1656_v15 = vpack.c.bf16 %v303_v6, %v302_v5  ;;  %v281_v2 = vld [vmem:[#allocation3 + $0x6f8] sm:$0xff]  ;;  %v312_v3 = vld [vmem:[#allocation3 + $0x7f0] sm:$0xff]  ;;  %v1674_v6 = vpack.c.bf16 %v295_v0, %v294_v62 }
  0x6d   :  { %1575 = vmatpush3.bf16.msra.mxu0 %v1574_v21  ;;  %v1626_v21 = vpack.c.bf16 %v255_v13, %v254_v12  ;;  %v313_v4 = vld [vmem:[#allocation3 + $0x7f8] sm:$0xff] }
  0x6e   :  { %1577 = vmatprep.subr.bf16.mxu0 %v1576_v23  ;;  %v1628_v23 = vpack.c.bf16 %v273_v18, %v272_v17  ;;  %v297_v12 = vld [vmem:[#allocation3 + $0x778] sm:$0xff]  ;;  %v882_v18 = vld [vmem:[%s1921_s3 + $0x8] sm:$0xff] }
  0x6f   :  { %1607 = vmatpush3.bf16.msra.mxu1 %v1606_v22  ;;  %v1658_v22 = vpack.c.bf16 %v287_v16, %v286_v14  ;;  %v56_v16 = vld [vmem:[%s1918_s0 + $0x70] sm:$0xff]  ;;  %v881_v17 = vld [vmem:[%s1921_s3] sm:$0xff] }
  0x70   :  { %1609 = vmatprep.subr.bf16.mxu1 %v1608_v27  ;;  %v1660_v27 = vpack.c.bf16 %v305_v20, %v304_v19  ;;  %v883_v19 = vld [vmem:[%s1921_s3 + $0x10] sm:$0xff]  ;;  %v1743_v20 = vmov 0.0|0.0  }
  0x71   :  { %1579 = vmatpush3.bf16.msra.mxu0 %v1578_v33  ;;  %v1630_v33 = vpack.c.bf16 %v257_v25, %v256_v24  ;;  %v885_v24 = vld [vmem:[%s1921_s3 + $0x20] sm:$0xff]  ;;  %v886_v25 = vld [vmem:[%s1921_s3 + $0x28] sm:$0xff] }
  0x72   :  { %1581 = vmatprep.subr.bf16.mxu0 %v1580_v35  ;;  %v1632_v35 = vpack.c.bf16 %v275_v30, %v274_v29  ;;  %v889_v30 = vld [vmem:[%s1921_s3 + $0x40] sm:$0xff] }
  0x73   :  { %1611 = vmatpush3.bf16.msra.mxu1 %v1610_v34  ;;  %v1662_v34 = vpack.c.bf16 %v289_v28, %v288_v26  ;;  %v1687_v26 = vpack.c.bf16 %v886_v25, %v885_v24  ;;  %v888_v28 = vld [vmem:[%s1921_s3 + $0x38] sm:$0xff]  ;;  %v1074_v24 = vld [vmem:[#allocation2] ss:$0 sm:$0xff] }
  0x74   :  { %1613 = vmatprep.subr.bf16.mxu1 %v1612_v39  ;;  %v1664_v39 = vpack.c.bf16 %v307_v32, %v306_v31  ;;  %v890_v31 = vld [vmem:[%s1921_s3 + $0x48] sm:$0xff] }
  0x75   :  { %1583 = vmatpush3.bf16.msra.mxu0 %v1582_v45  ;;  %v1634_v45 = vpack.c.bf16 %v259_v37, %v258_v36  ;;  %v1693_v32 = vpack.c.bf16 %v890_v31, %v889_v30  ;;  %v893_v36 = vld [vmem:[%s1921_s3 + $0x60] sm:$0xff]  ;;  %v894_v37 = vld [vmem:[%s1921_s3 + $0x68] sm:$0xff] }
  0x76   :  { %1617 = vmatprep.subr.bf16.mxu0 %v1616_v47  ;;  %v1636_v47 = vpack.c.bf16 %v277_v42, %v276_v41  ;;  %v1745_v42 = vmov 0.0  }
  0x77   :  { %1615 = vmatpush3.bf16.msra.mxu1 %v1614_v46  ;;  %v1666_v46 = vpack.c.bf16 %v291_v40, %v290_v38  ;;  %v1699_v38 = vpack.c.bf16 %v894_v37, %v893_v36  ;;  %v896_v40 = vld [vmem:[%s1921_s3 + $0x78] sm:$0xff] }
  0x78   :  { %1649 = vmatprep.subr.bf16.mxu1 %v1648_v51  ;;  %666 = vmatmul.mubr.f32.vlgmr.msra.gmra.mrb[4].mxu0 %v50_v57  ;;  %v1668_v51 = vpack.c.bf16 %v309_v44, %v308_v43  ;;  %v1638_v57 = vpack.c.bf16 %v261_v49, %v260_v48  ;;  %v977_v43 = vld [vmem:[%s1923_s5] sm:$0xff]  ;;  %v978_v44 = vld [vmem:[%s1923_s5 + $0x8] sm:$0xff] }
  0x79   :  { %1619 = vmatpush3.bf16.msra.mxu0 %v1618_v58  ;;  %805 = vmatprep.mubr.f32.mxu0 %v55_v7  ;;  %v1670_v58 = vpack.c.bf16 %v293_v52, %v292_v50 }
  0x7a   :  { %736 = vmatmul.mubr.f32.vlgmr.msra.gmra.mrb[4].mxu1 %v52_v59  ;;  %1621 = vmatprep.subr.bf16.mxu0 %v1620_v61  ;;  %v1640_v59 = vpack.c.bf16 %v279_v54, %v278_v53  ;;  %v263_v61 = vld [vmem:[#allocation3 + $0x668] sm:$0xff] }
  0x7b   :  { %1651 = vmatpush3.bf16.msra.mxu1 %v1650_v60  ;;  %875 = vmatprep.mubr.f32.mxu1 %v57_v9  ;;  %v262_v60 = vld [vmem:[#allocation3 + $0x660] sm:$0xff]  ;;  %v265_v9 = vld [vmem:[#allocation3 + $0x678] sm:$0xff] }
  0x7c   :  { %1653 = vmatprep.subr.bf16.mxu1 %v1652_v1  ;;  %v280_v1 = vld [vmem:[#allocation3 + $0x6f0] sm:$0xff]  ;;  %v1642_v5 = vpack.c.bf16 %v263_v61, %v262_v60 }
  0x7d   :  { %1623 = vmatpush3.bf16.msra.mxu0 %v1622_v8  ;;  %v1644_v7 = vpack.c.bf16 %v281_v2, %v280_v1  ;;  %v264_v8 = vld [vmem:[#allocation3 + $0x670] sm:$0xff] }
  0x7e   :  { %1625 = vmatprep.subr.bf16.mxu0 %v1624_v11  ;;  %v296_v11 = vld [vmem:[#allocation3 + $0x770] sm:$0xff]  ;;  %v1646_v13 = vpack.c.bf16 %v265_v9, %v264_v8 }
  0x7f   :  { %1655 = vmatpush3.bf16.msra.mxu1 %v1654_v10  ;;  %v1676_v10 = vpack.c.bf16 %v313_v4, %v312_v3  ;;  %v1678_v14 = vpack.c.bf16 %v297_v12, %v296_v11 }
  0x80   :  { %1657 = vmatprep.subr.bf16.mxu1 %v1656_v15  ;;  %v54_v15 = vld [vmem:[%s1918_s0 + $0x60] sm:$0xff] }
  0x81   :  { %1627 = vmatpush3.bf16.msra.mxu0 %v1626_v21  ;;  %v1681_v21 = vpack.c.bf16 %v882_v18, %v881_v17  ;;  %v1073_v18 = vld [vmem:[%s1922_s4] ss:$0 sm:$0xff] }
  0x82   :  { %1629 = vmatprep.subr.bf16.mxu0 %v1628_v23 }
  0x83   :  { %1659 = vmatpush3.bf16.msra.mxu1 %v1658_v22  ;;  %v884_v22 = vld [vmem:[%s1921_s3 + $0x18] sm:$0xff] }
  0x84   :  { %1661 = vmatprep.subr.bf16.mxu1 %v1660_v27  ;;  %v1684_v23 = vpack.c.bf16 %v884_v22, %v883_v19  ;;  %v887_v27 = vld [vmem:[%s1921_s3 + $0x30] sm:$0xff] }
  0x85   :  { %1631 = vmatpush3.bf16.msra.mxu0 %v1630_v33  ;;  %v1690_v29 = vpack.c.bf16 %v888_v28, %v887_v27  ;;  %v891_v33 = vld [vmem:[%s1921_s3 + $0x50] sm:$0xff] }
  0x86   :  { %1633 = vmatprep.subr.bf16.mxu0 %v1632_v35 }
  0x87   :  { %1663 = vmatpush3.bf16.msra.mxu1 %v1662_v34  ;;  %v892_v34 = vld [vmem:[%s1921_s3 + $0x58] sm:$0xff] }
  0x88   :  { %1665 = vmatprep.subr.bf16.mxu1 %v1664_v39  ;;  %v1696_v35 = vpack.c.bf16 %v892_v34, %v891_v33  ;;  %v895_v39 = vld [vmem:[%s1921_s3 + $0x70] sm:$0xff] }
  0x89   :  { %1635 = vmatpush3.bf16.msra.mxu0 %v1634_v45  ;;  %v1702_v41 = vpack.c.bf16 %v896_v40, %v895_v39  ;;  %v1705_v45 = vpack.c.bf16 %v978_v44, %v977_v43 }
  0x8a   :  { %1637 = vmatprep.subr.bf16.mxu0 %v1636_v47  ;;  %v1072_v47 = vld [vmem:[%s1920_s2] ss:$0 sm:$0xff] }
  0x8b   :  { %1667 = vmatpush3.bf16.msra.mxu1 %v1666_v46 }
  0x8c   :  { %1669 = vmatprep.subr.bf16.mxu1 %v1668_v51 }
  0x8d   :  { %1639 = vmatpush3.bf16.msra.mxu0 %v1638_v57 }
  0x8e   :  { %1641 = vmatprep.subr.bf16.mxu0 %v1640_v59 }
  0x8f   :  { %1671 = vmatpush3.bf16.msra.mxu1 %v1670_v58 }
  0x90   :  { %1673 = vmatprep.subr.bf16.mxu1 %v1672_v63 }
  0x91   :  { %1643 = vmatpush3.bf16.msra.mxu0 %v1642_v5 }
  0x92   :  { %1645 = vmatprep.subr.bf16.mxu0 %v1644_v7 }
  0x93   :  { %1675 = vmatpush3.bf16.msra.mxu1 %v1674_v6 }
  0x94   :  { %1677 = vmatprep.subr.bf16.mxu1 %v1676_v10 }
  0x95   :  { %1647 = vmatpush3.bf16.msra.mxu0 %v1646_v13 }
  0x96   :  { %1680 = vmatprep.subr.bf16.mxu0 %v1743_v20 }
  0x97   :  { %1679 = vmatpush3.bf16.msra.mxu1 %v1678_v14 }
  0x98   :  { %806 = vmatmul.mubr.f32.vlgmr.msra.gmra.mrb[6].mxu0 %v54_v15  ;;  %1704 = vmatprep.subr.bf16.mxu1 %v1743_v20  ;;  %v979_v15 = vld [vmem:[%s1923_s5 + $0x10] sm:$0xff] }
  0x99   :  { %1682 = vmatpush3.bf16.msra.mxu0 %v1681_v21  ;;  %1410 = vmatprep.mubr.msk.f32.mxu0 %vm1744_vm0, %v1745_v42 }
  0x9a   :  { %876 = vmatmul.mubr.f32.vlgmr.msra.gmra.mrb[6].mxu1 %v56_v16  ;;  %1683 = vmatprep.subr.bf16.mxu0 %v1743_v20  ;;  %v980_v16 = vld [vmem:[%s1923_s5 + $0x18] sm:$0xff] }
  0x9b   :  { %1421 = vmatprep.mubr.msk.f32.mxu1 %vm1744_vm0, %v1745_v42  ;;  %1706 = vmatpush3.bf16.msra.mxu1 %v1705_v45  ;;  %v1708_v17 = vpack.c.bf16 %v980_v16, %v979_v15 }
  0x9c   :  { %1707 = vmatprep.subr.bf16.mxu1 %v1743_v20 }
  0x9d   :  { %1685 = vmatpush3.bf16.msra.mxu0 %v1684_v23 }
  0x9e   :  { %1686 = vmatprep.subr.bf16.mxu0 %v1743_v20 }
  0x9f   :  { %1709 = vmatpush3.bf16.msra.mxu1 %v1708_v17 }
  0xa1   :  { %1688 = vmatpush3.bf16.msra.mxu0 %v1687_v26 }
  0xa2   :  { %1689 = vmatprep.subr.bf16.mxu0 %v1743_v20 }
  0xa5   :  { %1691 = vmatpush3.bf16.msra.mxu0 %v1690_v29 }
  0xa6   :  { %1692 = vmatprep.subr.bf16.mxu0 %v1743_v20 }
  0xa9   :  { %1694 = vmatpush3.bf16.msra.mxu0 %v1693_v32 }
  0xaa   :  { %1695 = vmatprep.subr.bf16.mxu0 %v1743_v20 }
  0xad   :  { %1697 = vmatpush3.bf16.msra.mxu0 %v1696_v35 }
  0xae   :  { %1698 = vmatprep.subr.bf16.mxu0 %v1743_v20 }
  0xb1   :  { %1700 = vmatpush3.bf16.msra.mxu0 %v1699_v38 }
  0xb2   :  { %1701 = vmatprep.subr.bf16.mxu0 %v1743_v20 }
  0xb5   :  { %1703 = vmatpush3.bf16.msra.mxu0 %v1702_v41 }
 0x10b   :  { %v1108_v46 = vpop.f32.mrb[0].mxu0 }
 0x10c   :  { %v1109_v48 = vpop.f32.mrb[1].mxu0 }
 0x10d   :  { %v1143_v49 = vpop.f32.mrb[0].mxu1  ;;  %v1110_v50 = vadd.f32 %v1109_v48, %v1108_v46 }
 0x10e   :  { %v1144_v51 = vpop.f32.mrb[1].mxu1 }
 0x10f   :  { %v1145_v52 = vadd.f32 %v1144_v51, %v1143_v49  ;;  %v388_v53 = vadd.f32 %v1110_v50, %v1072_v47 }
 0x111   :  { %v458_v54 = vadd.f32 %v1145_v52, %v388_v53 }
 0x12b   :  { %v1178_v55 = vpop.f32.mrb[2].mxu0 }
 0x12c   :  { %v1179_v56 = vpop.f32.mrb[3].mxu0 }
 0x12d   :  { %v1213_v57 = vpop.f32.mrb[2].mxu1  ;;  %v1180_v58 = vadd.f32 %v1179_v56, %v1178_v55 }
 0x12e   :  { %v1214_v59 = vpop.f32.mrb[3].mxu1 }
 0x12f   :  { %v1215_v60 = vadd.f32 %v1214_v59, %v1213_v57  ;;  %v528_v61 = vadd.f32 %v1180_v58, %v458_v54 }
 0x131   :  { %v598_v62 = vadd.f32 %v1215_v60, %v528_v61 }
 0x14b   :  { %v1248_v63 = vpop.f32.mrb[4].mxu0 }
 0x14c   :  { %v1249_v0 = vpop.f32.mrb[5].mxu0 }
 0x14d   :  { %v1283_v1 = vpop.f32.mrb[4].mxu1  ;;  %v1250_v2 = vadd.f32 %v1249_v0, %v1248_v63 }
 0x14e   :  { %v1284_v3 = vpop.f32.mrb[5].mxu1 }
 0x14f   :  { %v1285_v4 = vadd.f32 %v1284_v3, %v1283_v1  ;;  %v668_v5 = vadd.f32 %v1250_v2, %v598_v62 }
 0x151   :  { %v738_v6 = vadd.f32 %v1285_v4, %v668_v5 }
 0x16b   :  { %v1318_v7 = vpop.f32.mrb[6].mxu0 }
 0x16c   :  { %v1319_v8 = vpop.f32.mrb[7].mxu0 }
 0x16d   :  { %v1353_v9 = vpop.f32.mrb[6].mxu1  ;;  %v1320_v10 = vadd.f32 %v1319_v8, %v1318_v7 }
 0x16e   :  { %v1354_v11 = vpop.f32.mrb[7].mxu1 }
 0x16f   :  { %v1355_v12 = vadd.f32 %v1354_v11, %v1353_v9  ;;  %v808_v13 = vadd.f32 %v1320_v10, %v738_v6 }
 0x171   :  { %v878_v14 = vadd.f32 %v1355_v12, %v808_v13 }
 0x173   :  { %1411 = vmatmul.mubr.f32.vlgmr.msra.gmra.mrb[8].mxu0 %v878_v14 }
 0x246   :  { %v970_v19 = vpop.f32.mrb[8].mxu0 }
 0x247   :  { %v971_v20 = vadd.f32 %v1073_v18, %v970_v19  ;;  %v1412_v21 = vpop.f32.mrb[9].mxu0 }
 0x249   :  { %vm974_vm1 = vcmp.gt.f32.partialorder %v971_v20, 0.0  ;;  %v975_v22 = vmul.f32 0.01, %v971_v20 }
 0x24b   :  { %v976_v23 = vsel %vm974_vm1, %v971_v20, %v975_v22 }
 0x24c   :  { %1422 = vmatmul.mubr.msk.f32.vlgmr.msra.gmra.mrb[8].mxu1 %vm988_vm2, %v976_v23 }
 0x31f   :  { %v1058_v25 = vpop.f32.mrb[8].mxu1 }
 0x320   :  { %v1059_v26 = vadd.f32 %v1074_v24, %v1058_v25  ;;  %v1423_v27 = vpop.f32.mrb[9].mxu1 }
 0x322   :  { %vm1062_vm3 = vcmp.gt.f32.partialorder %v1059_v26, 0.0  ;;  %v1063_v28 = vmul.f32 0.01, %v1059_v26 }
 0x324   :  { %v1064_v29 = vsel %vm1062_vm3, %v1059_v26, %v1063_v28 }
 0x325   :  { %1066 = vst.msk [vmem:[%s1925_s7] sm:$0xff] %vm1065_vm4, %v1064_v29 }
 0x326   :  { %1071 = vsyncpa [#allocation4], 1 }

</bundles_post_ra>
